<compile_context>
chip_gen: v7x
topology: tpu7x:2x2x1
jax: 0.10.0
libtpu: 0.0.40
codegen_flags: <defaults>
</compile_context>

<pallas_src>
import functools

import numpy as np
import jax
import jax.numpy as jnp
from jax.experimental import pallas as pl
from jax.experimental.pallas import tpu as pltpu

EPS = 1e-5

_COMPILER_PARAMS = pltpu.CompilerParams(
    dimension_semantics=("parallel",),          # image blocks are independent
    vmem_limit_bytes=32 * 1024 * 1024,          # safe on v5e/v6e/v7x (64 MiB physical)
)


# --------------------------------------------------------------------------- kernels
def _conv_pass_kernel(nb, H, apply_bn_relu, *refs):
    """One image block: [BN affine + ReLU] -> im2row staging -> fused 3x3-conv matmul
    -> per-block BatchNorm partial sums.

    refs (apply_bn_relu=True):  a, scale, shift, w, conv_out, stats_out, stage
    refs (apply_bn_relu=False): a,               w, conv_out, stats_out, stage
    """
    if apply_bn_relu:
        a_ref, sc_ref, sh_ref, w_ref, y_ref, stats_ref, stage_ref = refs
    else:
        a_ref, w_ref, y_ref, stats_ref, stage_ref = refs

    WC = a_ref.shape[-1]                       # W * C_in of this conv
    act = a_ref[...]
    if apply_bn_relu:
        # Previous BN + ReLU (Dropout2d with p=0 is the identity).
        act = jnp.maximum(act * sc_ref[...] + sh_ref[...], 0.0)
    act = act.astype(stage_ref.dtype)          # bf16 into the MXU

    # im2row: stage[h, kh*WC:(kh+1)*WC] = act[h + kh - 1, :], zero vertical halo.
    # Per-image bases are multiples of H (sublane-tile aligned for bf16).
    zero_row = jnp.zeros((1, WC), stage_ref.dtype)
    for i in range(nb):                        # static image loop within the block
        r0 = i * H
        blk = act[r0:r0 + H, :]
        stage_ref[r0:r0 + H, WC:2 * WC] = blk                       # kh = 1 (aligned)
        stage_ref[r0:r0 + 1, 0:WC] = zero_row                       # kh = 0, top halo
        stage_ref[r0 + 1:r0 + H, 0:WC] = blk[0:H - 1, :]
        stage_ref[r0:r0 + H - 1, 2 * WC:3 * WC] = blk[1:H, :]       # kh = 2
        stage_ref[r0 + H - 1:r0 + H, 2 * WC:3 * WC] = zero_row      # bottom halo

    # Single MXU matmul per conv block: M = nb*H, K = 3*W*C_in, N = W*C_out
    # (horizontal taps + horizontal zero padding folded into the banded weight).
    acc = jnp.dot(stage_ref[...], w_ref[...], preferred_element_type=jnp.float32)
    y_ref[...] = acc

    # Two-phase BatchNorm, phase 1: lane-wise partial sums for this block.
    col_sum = jnp.sum(acc, axis=0, keepdims=True)
    col_sq = jnp.sum(acc * acc, axis=0, keepdims=True)
    stats_ref[...] = jnp.concatenate(
        [col_sum, col_sq, jnp.zeros((6, acc.shape[-1]), jnp.float32)], axis=0)


def _bn_relu_kernel(a_ref, sc_ref, sh_ref, o_ref):
    # Final BN affine + ReLU (Dropout2d(p=0) = identity), lane-dense unmasked store.
    o_ref[...] = jnp.maximum(a_ref[...] * sc_ref[...] + sh_ref[...], 0.0)


# ------------------------------------------------------------------- pass wrappers
def _conv_pass(rows, w_fused, scale_lane, shift_lane, *, nb, H, WCin, WCout,
               apply_bn_relu):
    n_rows = rows.shape[0]
    n_blocks = n_rows // (nb * H)

    args = [rows]
    in_specs = [pl.BlockSpec((nb * H, WCin), lambda n: (n, 0))]
    if apply_bn_relu:
        args += [scale_lane, shift_lane]
        in_specs += [pl.BlockSpec((1, WCin), lambda n: (0, 0)),
                     pl.BlockSpec((1, WCin), lambda n: (0, 0))]
    args.append(w_fused)
    in_specs.append(pl.BlockSpec((3 * WCin, WCout), lambda n: (0, 0)))

    kernel = functools.partial(_conv_pass_kernel, nb, H, apply_bn_relu)
    conv_rows, stats = pl.pallas_call(
        kernel,
        grid=(n_blocks,),
        in_specs=in_specs,
        out_specs=(pl.BlockSpec((nb * H, WCout), lambda n: (n, 0)),
                   pl.BlockSpec((8, WCout), lambda n: (n, 0))),
        out_shape=(jax.ShapeDtypeStruct((n_rows, WCout), jnp.float32),
                   jax.ShapeDtypeStruct((n_blocks * 8, WCout), jnp.float32)),
        scratch_shapes=[pltpu.VMEM((nb * H, 3 * WCin), jnp.bfloat16)],  # im2row slab
        compiler_params=_COMPILER_PARAMS,
    )(*args)
    return conv_rows, stats


def _bn_relu_pass(rows, scale_lane, shift_lane, *, nb, H, WCout):
    n_rows = rows.shape[0]
    n_blocks = n_rows // (nb * H)
    return pl.pallas_call(
        _bn_relu_kernel,
        grid=(n_blocks,),
        in_specs=[pl.BlockSpec((nb * H, WCout), lambda n: (n, 0)),
                  pl.BlockSpec((1, WCout), lambda n: (0, 0)),
                  pl.BlockSpec((1, WCout), lambda n: (0, 0))],
        out_specs=pl.BlockSpec((nb * H, WCout), lambda n: (n, 0)),
        out_shape=jax.ShapeDtypeStruct((n_rows, WCout), jnp.float32),
        compiler_params=_COMPILER_PARAMS,
    )(rows, scale_lane, shift_lane)


def _fold_bn_stats(stats, W, Cout, count, gamma, beta):
    """Two-phase BatchNorm, phase 2: global per-channel fold of the per-block partial
    sums, then lane-replicated (1, W*Cout) scale/shift rows for the normalize pass."""
    s = stats.reshape(-1, 8, W, Cout)
    ch_sum = jnp.sum(s[:, 0], axis=(0, 1))                 # (Cout,)
    ch_sq = jnp.sum(s[:, 1], axis=(0, 1))
    mean = ch_sum / count
    var = jnp.maximum(ch_sq / count - mean * mean, 0.0)    # biased, training-mode
    scale = gamma * jax.lax.rsqrt(var + EPS)
    shift = beta - mean * scale
    lane = lambda v: jnp.tile(v.reshape(1, Cout), (W, 1)).reshape(1, W * Cout)
    return lane(scale).astype(jnp.float32), lane(shift).astype(jnp.float32)


def _fused_conv_weight(w_oihw, Wsp):
    """PyTorch (Cout, Cin, 3, 3) conv weight -> (3*Wsp*Cin, Wsp*Cout) banded
    row-Toeplitz bf16 slab for the fused single-matmul conv.

    K runs over the three vertical taps [kh=0 | kh=1 | kh=2], each a (Wsp*Cin) band;
    within a band B[wi*Cin + ci, wo*Cout + co] = w[co, ci, kh, kw] with wi = wo + kw - 1
    clipped to [0, Wsp) -- the clipping implements the conv's horizontal zero padding.
    # TODO(synk): for large W*C, tile W into ~128-lane chunks with a 1-column halo (or
    # fall back to K=9*Cin im2col); the dense banded slab grows as 3*(W*C)^2.
    """
    w = np.asarray(jax.device_get(w_oihw), np.float32)     # (Cout, Cin, 3, 3)
    Cout, Cin, KH, KW = w.shape
    taps = np.transpose(w, (2, 3, 1, 0))                   # (kh, kw, Cin, Cout)
    B = np.zeros((KH, Wsp * Cin, Wsp * Cout), np.float32)
    for kh in range(KH):
        for kw in range(KW):
            for wo in range(Wsp):
                wi = wo + kw - 1
                if 0 <= wi < Wsp:
                    B[kh, wi * Cin:(wi + 1) * Cin,
                      wo * Cout:(wo + 1) * Cout] = taps[kh, kw]
    return jnp.asarray(B.reshape(KH * Wsp * Cin, Wsp * Cout), jnp.bfloat16)


# ------------------------------------------------------------------------- forward
def double_conv_dropout(x_nchw, params, dropout_prob=0.0, images_per_block=1):
    """Forward pass of DoubleConvDropout (training-mode BN, p=0). NCHW in / NCHW out."""
    assert dropout_prob == 0.0, "only the default dropout_prob=0.0 is implemented"
    # TODO(synk): for dropout_prob > 0, draw a per-(sample, channel) Bernoulli mask with
    # pltpu.prng_seed / pltpu.prng_random_bits inside the conv-pass kernels and scale
    # kept channels by 1/(1-p).
    w1, b1, g1, be1, w2, b2, g2, be2 = params
    # Conv biases b1/b2 are intentionally unused: training-mode BatchNorm is invariant
    # to a per-channel constant added to its input, so the bias is mathematically dead.
    del b1, b2

    N, Cin, H, W = x_nchw.shape
    Cout = w1.shape[0]
    nb = images_per_block                      # raise until the per-step working set
    assert N % nb == 0                         # fills the (double-buffered) VMEM budget
    count = float(N * H * W)

    # NCHW -> lane-dense (N*H, W*Cin) bf16 rows.  (If the caller can hand over NHWC
    # directly, this transpose round-trip disappears.)
    x_rows = jnp.transpose(x_nchw, (0, 2, 3, 1)).reshape(N * H, W * Cin)
    x_rows = x_rows.astype(jnp.bfloat16)

    W1f = _fused_conv_weight(w1, W)            # (3*W*Cin,  W*Cout) bf16
    W2f = _fused_conv_weight(w2, W)            # (3*W*Cout, W*Cout) bf16

    # Pass 1: conv1 + BN1 partial sums.
    conv1_rows, stats1 = _conv_pass(
        x_rows, W1f, None, None, nb=nb, H=H, WCin=W * Cin, WCout=W * Cout,
        apply_bn_relu=False)
    sc1, sh1 = _fold_bn_stats(stats1, W, Cout, count, g1, be1)

    # Pass 2: BN1 + ReLU (+ Dropout2d(p=0)) + conv2 + BN2 partial sums.
    conv2_rows, stats2 = _conv_pass(
        conv1_rows, W2f, sc1, sh1, nb=nb, H=H, WCin=W * Cout, WCout=W * Cout,
        apply_bn_relu=True)
    sc2, sh2 = _fold_bn_stats(stats2, W, Cout, count, g2, be2)

    # Pass 3: BN2 + ReLU (+ Dropout2d(p=0)).
    out_rows = _bn_relu_pass(conv2_rows, sc2, sh2, nb=nb, H=H, WCout=W * Cout)

    # (N*H, W*Cout) -> NCHW
    return jnp.transpose(out_rows.reshape(N, H, W, Cout), (0, 3, 1, 2))


# ------------------------------------------------------------------------ reference
def reference_forward(x_nchw, params):
    """Plain-JAX f32 reference matching the PyTorch training-mode forward (p=0)."""
    w1, b1, g1, be1, w2, b2, g2, be2 = params

    def block(x, w, b, g, be):
        y = jax.lax.conv_general_dilated(
            x, w, window_strides=(1, 1), padding=((1, 1), (1, 1)),
            dimension_numbers=('NCHW', 'OIHW', 'NCHW'))
        y = y + b[None, :, None, None]
        mean = jnp.mean(y, axis=(0, 2, 3), keepdims=True)
        var = jnp.mean((y - mean) ** 2, axis=(0, 2, 3), keepdims=True)
        y = (y - mean) * g[None, :, None, None] * jax.lax.rsqrt(var + EPS) \
            + be[None, :, None, None]
        return jnp.maximum(y, 0.0)

    x = block(x_nchw, w1, b1, g1, be1)
    x = block(x, w2, b2, g2, be2)
    return x


if __name__ == "__main__":
    N, Cin, Cout, H, W = 2, 4, 8, 16, 16

    key = jax.random.PRNGKey(0)
    ks = jax.random.split(key, 9)
    x = jax.random.normal(ks[0], (N, Cin, H, W), jnp.float32)

    # Deterministic synthetic parameters (shapes match nn.Conv2d / nn.BatchNorm2d).
    w1 = 0.1 * jax.random.normal(ks[1], (Cout, Cin, 3, 3), jnp.float32)
    b1 = 0.1 * jax.random.normal(ks[2], (Cout,), jnp.float32)
    g1 = 1.0 + 0.1 * jax.random.normal(ks[3], (Cout,), jnp.float32)
    be1 = 0.1 * jax.random.normal(ks[4], (Cout,), jnp.float32)
    w2 = 0.1 * jax.random.normal(ks[5], (Cout, Cout, 3, 3), jnp.float32)
    b2 = 0.1 * jax.random.normal(ks[6], (Cout,), jnp.float32)
    g2 = 1.0 + 0.1 * jax.random.normal(ks[7], (Cout,), jnp.float32)
    be2 = 0.1 * jax.random.normal(ks[8], (Cout,), jnp.float32)
    params = (w1, b1, g1, be1, w2, b2, g2, be2)

    out = jax.block_until_ready(double_conv_dropout(x, params, dropout_prob=0.0))
    ref = jax.block_until_ready(reference_forward(x, params))

    assert out.shape == (N, Cout, H, W), out.shape
    max_err = float(jnp.max(jnp.abs(out - ref)))
    rel_err = float(jnp.linalg.norm(out - ref) / jnp.linalg.norm(ref))
    # Tolerances account for bf16 activations/weights on the MXU (f32 accumulation)
    # vs. the pure-f32 reference.
    if max_err > 5e-2 or rel_err > 2e-2:
        raise AssertionError(
            f"mismatch vs reference: max_abs_err={max_err:.3e}, rel_err={rel_err:.3e}")

    print("KERNEL_OK")
</pallas_src>

<mosaic_0001>
module attributes {stable_mosaic.version = 11 : i64} {
  func.func @_conv_pass_kernel(%arg0: i32, %arg1: memref<16x64xbf16, #tpu.memory_space<vmem>>, %arg2: memref<192x128xbf16, #tpu.memory_space<vmem>>, %arg3: memref<16x128xf32, #tpu.memory_space<vmem>>, %arg4: memref<8x128xf32, #tpu.memory_space<vmem>>, %arg5: memref<16x192xbf16, #tpu.memory_space<vmem>>) attributes {dimension_semantics = [#tpu.dimension_semantics<parallel>], iteration_bounds = array<i64: 2>, scalar_prefetch = 0 : i64, scratch_operands = 1 : i64, tpu.core_type = #tpu.core_type<tc>, window_params = [{transform_indices = @transform_0, window_bounds = array<i64: 16, 64>}, {pipeline_mode = #tpu.pipeline_mode<synchronous>, transform_indices = @transform_1, window_bounds = array<i64: 192, 128>}, {transform_indices = @transform_2, window_bounds = array<i64: 16, 128>}, {transform_indices = @transform_3, window_bounds = array<i64: 8, 128>}]} {
    %c0 = arith.constant 0 : index
    %c0_0 = arith.constant 0 : index
    %0 = vector.load %arg1[%c0, %c0_0] : memref<16x64xbf16, #tpu.memory_space<vmem>>, vector<16x64xbf16>
    %cst = arith.constant 0.000000e+00 : bf16
    %1 = vector.broadcast %cst : bf16 to vector<1x64xbf16>
    %c0_1 = arith.constant 0 : index
    %c64 = arith.constant 64 : index
    %2 = vector.load %arg5[%c0_1, %c64] : memref<16x192xbf16, #tpu.memory_space<vmem>>, vector<16x64xbf16>
    tpu.vector_store %arg5[%c0_1, %c64], %0 {strides = array<i32>} : memref<16x192xbf16, #tpu.memory_space<vmem>>, vector<16x64xbf16>,
    %c0_2 = arith.constant 0 : index
    %c0_3 = arith.constant 0 : index
    %3 = vector.load %arg5[%c0_2, %c0_3] : memref<16x192xbf16, #tpu.memory_space<vmem>>, vector<1x64xbf16>
    tpu.vector_store %arg5[%c0_2, %c0_3], %1 {strides = array<i32>} : memref<16x192xbf16, #tpu.memory_space<vmem>>, vector<1x64xbf16>,
    %4 = vector.extract_strided_slice %0 {offsets = [0, 0], sizes = [15, 64], strides = [1, 1]} : vector<16x64xbf16> to vector<15x64xbf16>
    %c1 = arith.constant 1 : index
    %c0_4 = arith.constant 0 : index
    %5 = vector.load %arg5[%c1, %c0_4] : memref<16x192xbf16, #tpu.memory_space<vmem>>, vector<15x64xbf16>
    tpu.vector_store %arg5[%c1, %c0_4], %4 {strides = array<i32>} : memref<16x192xbf16, #tpu.memory_space<vmem>>, vector<15x64xbf16>,
    %6 = vector.extract_strided_slice %0 {offsets = [1, 0], sizes = [15, 64], strides = [1, 1]} : vector<16x64xbf16> to vector<15x64xbf16>
    %c0_5 = arith.constant 0 : index
    %c128 = arith.constant 128 : index
    %7 = vector.load %arg5[%c0_5, %c128] : memref<16x192xbf16, #tpu.memory_space<vmem>>, vector<15x64xbf16>
    tpu.vector_store %arg5[%c0_5, %c128], %6 {strides = array<i32>} : memref<16x192xbf16, #tpu.memory_space<vmem>>, vector<15x64xbf16>,
    %c15 = arith.constant 15 : index
    %c128_6 = arith.constant 128 : index
    %8 = vector.load %arg5[%c15, %c128_6] : memref<16x192xbf16, #tpu.memory_space<vmem>>, vector<1x64xbf16>
    tpu.vector_store %arg5[%c15, %c128_6], %1 {strides = array<i32>} : memref<16x192xbf16, #tpu.memory_space<vmem>>, vector<1x64xbf16>,
    %c0_7 = arith.constant 0 : index
    %c0_8 = arith.constant 0 : index
    %9 = vector.load %arg5[%c0_7, %c0_8] : memref<16x192xbf16, #tpu.memory_space<vmem>>, vector<16x192xbf16>
    %c0_9 = arith.constant 0 : index
    %c0_10 = arith.constant 0 : index
    %10 = vector.load %arg2[%c0_9, %c0_10] : memref<192x128xbf16, #tpu.memory_space<vmem>>, vector<192x128xbf16>
    %cst_11 = arith.constant dense<0.000000e+00> : vector<16x128xf32>
    %11 = tpu.matmul %9, %10, %cst_11 {dimension_numbers = #tpu.dot_dimension_numbers<[1], [0], [0], [1], [0, 0, 1, 1], [], []>} : vector<16x192xbf16>, vector<192x128xbf16>, vector<16x128xf32> -> vector<16x128xf32>
    %c0_12 = arith.constant 0 : index
    %c0_13 = arith.constant 0 : index
    %12 = vector.load %arg3[%c0_12, %c0_13] : memref<16x128xf32, #tpu.memory_space<vmem>>, vector<16x128xf32>
    tpu.vector_store %arg3[%c0_12, %c0_13], %11 {strides = array<i32>} : memref<16x128xf32, #tpu.memory_space<vmem>>, vector<16x128xf32>,
    %cst_14 = arith.constant dense<0.000000e+00> : vector<128xf32>
    %13 = vector.multi_reduction <add>, %11, %cst_14 [0] : vector<16x128xf32> to vector<128xf32>
    %14 = vector.shape_cast %13 : vector<128xf32> to vector<1x128xf32>
    %15 = arith.mulf %11, %11 : vector<16x128xf32>
    %cst_15 = arith.constant dense<0.000000e+00> : vector<128xf32>
    %16 = vector.multi_reduction <add>, %15, %cst_15 [0] : vector<16x128xf32> to vector<128xf32>
    %17 = vector.shape_cast %16 : vector<128xf32> to vector<1x128xf32>
    %cst_16 = arith.constant 0.000000e+00 : f32
    %18 = vector.broadcast %cst_16 : f32 to vector<6x128xf32>
    %19 = tpu.concatenate %14, %17, %18 in 0 : vector<1x128xf32>, vector<1x128xf32>, vector<6x128xf32> -> vector<8x128xf32>
    %c0_17 = arith.constant 0 : index
    %c0_18 = arith.constant 0 : index
    %20 = vector.load %arg4[%c0_17, %c0_18] : memref<8x128xf32, #tpu.memory_space<vmem>>, vector<8x128xf32>
    tpu.vector_store %arg4[%c0_17, %c0_18], %19 {strides = array<i32>} : memref<8x128xf32, #tpu.memory_space<vmem>>, vector<8x128xf32>,
    return
  }
  func.func @transform_0(%arg0: i32) -> (i32, i32) {
    %c0_i32 = arith.constant 0 : i32
    %c0_i32_0 = arith.constant 0 : i32
    return %arg0, %c0_i32 : i32, i32
  }
  func.func @transform_1(%arg0: i32) -> (i32, i32) {
    %c0_i32 = arith.constant 0 : i32
    %c0_i32_0 = arith.constant 0 : i32
    %c0_i32_1 = arith.constant 0 : i32
    return %c0_i32, %c0_i32_0 : i32, i32
  }
  func.func @transform_2(%arg0: i32) -> (i32, i32) {
    %c0_i32 = arith.constant 0 : i32
    %c0_i32_0 = arith.constant 0 : i32
    return %arg0, %c0_i32 : i32, i32
  }
  func.func @transform_3(%arg0: i32) -> (i32, i32) {
    %c0_i32 = arith.constant 0 : i32
    %c0_i32_0 = arith.constant 0 : i32
    return %arg0, %c0_i32 : i32, i32
  }
}

</mosaic_0001>

<bundles_post_ra>
// kernel: tpu_custom_call.1
= control target key start
LH: loop header
LB: loop body
LE: loop exit
PB: predicated region body
PF: predicated region fallthrough
CT: control target
= control target key end

     0   :  { %9 = vsyncpa [#allocation4], 0  ;;  %s1130_s0 = inlined_call_operand.hbm [shape: bf16[32,64], index: 0, kind: input, shape index: {}]   ;;  %s1131_s1 = inlined_call_operand.hbm [shape: bf16[192,128], index: 1, kind: input, shape index: {}]   ;;  %s1132_s2 = inlined_call_operand.hbm [shape: f32[32,128], index: 2, kind: output, shape index: {0}]   ;;  %s1133_s3 = inlined_call_operand.hbm [shape: f32[16,128], index: 3, kind: output, shape index: {1}]  }
   0x1   :  { %11 = vsyncpa [#allocation4 + $0x1], 0 }
   0x2   :  { %12 = vsyncpa [#allocation7], 0 }
   0x3   :  { %13 = vsyncpa [#allocation5], 0 }
   0x4   :  { %15 = vsyncpa [#allocation5 + $0x1], 0 }
   0x5   :  { %16 = vsyncpa [#allocation10], 0 }
   0x6   :  { %18 = vsyncpa [#allocation10 + $0x1], 0  ;;  %s885_s12 = smov 0   ;;  %s887_s13 = smov 0  }
   0x7   :  { %s889_s14 = smov 0   ;;  %s891_s15 = smov 0  }
   0x8 LB: > { %s906_s16 = sadd.s32 4294967295, %s853_s15   ;;  %s577_s17 = sadd.s32 4294967294, %s853_s15   ;;  %s853_s15 = sphi %s891_s15, %s1153_s15   ;;  %s849_s14 = sphi %s889_s14, %s1152_s14   ;;  %s845_s13 = sphi %s887_s13, %s1151_s13   ;;  %s841_s12 = sphi %s885_s12, %s1150_s12  }
   0x9   : > { %p44_p0 = scmp.ne.s32.totalorder %s845_s13, %s841_s12  ;;  %p1134_p1 = scmp.eq.s32.totalorder %s906_s16, 0 }
   0xa   : > { %p95_p3 = scmp.eq.s32.totalorder %s577_s17, 1  ;;  %p578_p5 = scmp.ge.s32.totalorder %s853_s15, 1 }
   0xb   : > { %p915_p4 = por %p1134_p1, %p44_p0  ;;  %p128_p7 = scmp.lt.s32.totalorder %s853_s15, 3 }
   0xc   : > { %p920_p6 = por %p95_p3, %p44_p0  ;;  %s855_s21 = smov [#allocation6]  }
   0xd   : > { %s1137_s18 = scalar_select %p915_p4, 1, 0 }
   0xe   : > { %s1138_s19 = scalar_select %p920_p6, 1, 0 }
   0xf   : > { %p925_p8 = pnand %p578_p5, %p128_p7  ;;  %s140_s22 = sshll.u32 %s855_s21, 4  ;;  %s929_s22 = int_to_ptr.vmem [resolvable:$true] %s140_s22 }
  0x10   : > { %s941_s24 = sadd.s32 1, %s853_s15   ;;  %s31_s25 = sadd.s32 1, %s849_s14 }
  0x11   : > { %s1139_s20 = scalar_select %p925_p8, 1, 0 }
  0x12   : > { %p622_p9 = pneg %p925_p8  ;;  %s28_s26 = ssub.s32 %s853_s15, %s941_s24 }
  0x13   : > { %s693_s29 = scalar_lea.hbm %s1131_s1, 1536 }
  0x14   : > { %p936_p11 = pnand %p622_p9, %p1134_p1  ;;  %p694_p12 = scmp.ne.s32.totalorder %s1131_s1, %s693_s29 }
  0x15   : > { %p700_p5 = scmp.lt.u32.totalorder %s693_s29, %s1131_s1 }
  0x16   : > { %p695_p13 = pneg %p936_p11 }
  0x18   : > { %p696_p0 = pnand %p695_p13, %p694_p12 }
  0x1a   : > { %p697_p3 = pneg %p696_p0 }
  0x1c   : > { %p702_p7 = pnand %p700_p5, %p697_p3 }
  0x1e   : > { %705 = shalt.err (!%p702_p7)
}
  0x1f   : > { %s706_s7 = scalar_lea.vmem %s929_s22, 1536  ;;  %p714_p2 = scmp.lt.s32.totalorder %s929_s22, %s929_s22 }
  0x20   : > { %p707_p9 = scmp.ne.s32.totalorder %s929_s22, %s706_s7  ;;  %p715_p6 = scmp.lt.s32.totalorder %s706_s7, %s706_s7 }
  0x22   : > { %p709_p10 = pnand %p707_p9, %p695_p13  ;;  %p716_p4 = por %p715_p6, %p714_p2 }
  0x24   : > { %p710_p1 = pneg %p709_p10 }
  0x26   : > { %p717_p8 = pnand %p716_p4, %p710_p1 }
  0x28   : > { %720 = shalt.err (!%p717_p8)
}
  0x29   : > { %s856_s8 = smov 64   ;;  %s857_s9 = smov 4  }
  0x2a   : > { %625 = dma.hbm_to_vmem [thread:$0]  (!%p936_p11), %s1131_s1, 1536, %s929_s22, [#allocation7], %s856_s8, %s856_s8, %s857_s9  }
  0x2b   : > { %p29_p1 = scmp.eq.s32.totalorder %s28_s26, 0  ;;  %p38_p2 = scmp.ne.s32.totalorder %s849_s14, %s845_s13 }
  0x2c   : > { %p39_p4 = scmp.eq.s32.totalorder %s853_s15, 0  ;;  %p638_p6 = scmp.lt.s32.totalorder %s853_s15, 2 }
  0x2d   : > { %s975_s17 = scalar_select %p29_p1, %s849_s14, %s31_s25  }
  0x2e   : > { %p40_p8 = por %p39_p4, %p38_p2  ;;  %p1141_p10 = scmp.eq.s32.totalorder %s906_s16, 1 }
  0x2f   : > { %s154_s23 = sand.u32 1, %s849_s14   ;;  %s610_s27 = sshll.u32 %s853_s15, 7 }
  0x30   : > { %p979_p12 = por %p1141_p10, %p38_p2  ;;  %s581_s28 = sshll.u32 %s154_s23, 3 }
  0x31   : > { %s988_s4 = scalar_lea.hbm %s1130_s0, %s610_s27  ;;  %s158_s22 = scalar_lea.vmem [#allocation3], %s581_s28 }
  0x32   : > { %s165_s25 = sshll.u32 %s158_s22, 4  ;;  %p990_p11 = pnand %p638_p6, %p40_p8  ;;  %s994_s25 = int_to_ptr.vmem [resolvable:$true] %s165_s25 }
  0x33   : > { %s996_s5 = scalar_lea.sflag [#allocation4], %s154_s23  ;;  %s721_s6 = scalar_lea.hbm %s988_s4, 128 }
  0x34   : > { %p722_p13 = scmp.ne.s32.totalorder %s988_s4, %s721_s6  ;;  %p723_p0 = pneg %p990_p11 }
  0x35   : > { %s726_s11 = scalar_lea.hbm %s1130_s0, 256  ;;  %p727_p7 = scmp.lt.u32.totalorder %s988_s4, %s1130_s0 }
  0x36   : > { %p724_p3 = pnand %p723_p0, %p722_p13  ;;  %p728_p9 = scmp.lt.u32.totalorder %s726_s11, %s721_s6 }
  0x37   : > { %p730_p2 = scmp.lt.u32.totalorder %s721_s6, %s988_s4 }
  0x38   : > { %p725_p5 = pneg %p724_p3  ;;  %p729_p1 = por %p728_p9, %p727_p7 }
  0x3a   : > { %p731_p4 = por %p730_p2, %p729_p1 }
  0x3c   : > { %p732_p6 = pnand %p731_p4, %p725_p5 }
  0x3e   : > { %735 = shalt.err (!%p732_p6)
}
  0x3f   : > { %s736_s23 = scalar_lea.vmem %s994_s25, 128  ;;  %s858_s29 = smov [#allocation3]  }
  0x40   : > { %p737_p8 = scmp.ne.s32.totalorder %s994_s25, %s736_s23  ;;  %s741_s30 = sshll.u32 %s858_s29, 4  ;;  %s742_s30 = int_to_ptr.vmem [resolvable:$false] %s741_s30 }
  0x41   : > { %s743_s22 = scalar_lea.vmem %s742_s30, 256  ;;  %p744_p3 = scmp.lt.s32.totalorder %s994_s25, %s742_s30 }
  0x42   : > { %p739_p10 = pnand %p737_p8, %p723_p0  ;;  %p745_p7 = scmp.lt.s32.totalorder %s743_s22, %s736_s23 }
  0x44   : > { %p740_p13 = pneg %p739_p10  ;;  %p746_p9 = por %p745_p7, %p744_p3 }
  0x46   : > { %p747_p1 = pnand %p746_p9, %p740_p13 }
  0x48   : > { %750 = shalt.err (!%p747_p1)
}
  0x49   : > { %629 = dma.hbm_to_vmem [thread:$0]  (!%p990_p11), %s988_s4, 128, %s994_s25, %s996_s5, %s856_s8, %s856_s8, %s857_s9  }
  0x4a   : > { %p1144_p0 = scmp.ne.s32.totalorder %s1139_s20, 0 }
  0x4b   : > { %s1030_s6 = sand.u32 (!%p1144_p0), 1, %s845_s13   ;;  %p1145_p5 = scmp.ne.s32.totalorder (!%p1144_p0), %s1137_s18, 0 }
  0x4c   : > { %177 = sbr.rel (%p1144_p0) target bundleno = 478 (0x1de), region = 28  ;;  %s585_s7 = sshll.u32 (!%p1144_p0), %s1030_s6, 3 }
  0x4d   : > { %s180_s10 = scalar_lea.sflag (!%p1144_p0), [#allocation4], %s1030_s6  ;;  %s183_s26 = scalar_lea.vmem (!%p1144_p0), [#allocation3], %s585_s7 }
  0x53   : > { %824 = dma.done.wait (%p1145_p5), %s180_s10, 128  }
  0x54   : > { %826 = vsyncadd (%p1145_p5), %s180_s10, 4294967168  ;;  %p1146_p11 = scmp.eq.s32.totalorder %s906_s16, 0 }
  0x56   : > { %828 = dma.done.wait (%p1146_p11), [#allocation7], 1536   ;;  %p1147_p2 = pmov %p1146_p11 }
  0x57   : > { %v859_v0 = vmov 0   ;;  %v680_v1 = vld [vmem:[%s183_s26] sm:$0xff]   ;;  %v681_v2 = vld [vmem:[#allocation6] sm:$0xff]   ;;  %s860_s20 = smov 64   ;;  %v682_v5 = vld [vmem:[#allocation6 + $0x8] sm:$0xff]   ;;  %vm244_vm1 = vcmask 523264  }
  0x58   : > { %830 = vsyncadd (%p1147_p2), [#allocation7], 4294965760  ;;  %366 = vmatprep.subr.bf16.mxu0 %v859_v0  ;;  %225 = vrot.lane.b32.xlu0 %v680_v1, %s860_s20  ;;  %v237_v3 = vshrl.u32 %v680_v1, 16  ;;  %v240_v4 = vshll.u32 %v680_v1, 16  ;;  %vm253_vm0 = vsmask.f32 7424 }
  0x59   : > { %367 = vmatpush1.bf16.msra.mxu0 %v681_v2  ;;  %v683_v9 = vld [vmem:[#allocation6 + $0x10] sm:$0xff]   ;;  %vm254_vm2 = vmand %vm244_vm1, %vm253_vm0  ;;  %v684_v11 = vld [vmem:[#allocation6 + $0x18] sm:$0xff]   ;;  %vm258_vm3 = vcmask 523271   ;;  %vm259_vm4 = vsmask.f32 7966  ;;  %vm228_vm6 = vcmask 1048064  }
  0x5a   : > { %v239_v6 = vrot.slane %v237_v3, 7  ;;  %368 = vmatprep.subr.bf16.mxu0 %v859_v0  ;;  %v250_v8 = vrot.slane %v240_v4, 1  ;;  %v255_v12 = vld [vmem:[#allocation2 + $0x8] sm:$0xff]  ;;  %v685_v14 = vld [vmem:[#allocation6 + $0x20] sm:$0xff]   ;;  %vm260_vm5 = vmand %vm258_vm3, %vm259_vm4  ;;  %vm230_vm7 = vcmask 516096   ;;  %s587_s18 = sshll.u32 %s1030_s6, 4 }
  0x5b   : > { %v686_v15 = vld [vmem:[#allocation6 + $0x28] sm:$0xff]   ;;  %v687_v17 = vld [vmem:[#allocation6 + $0x30] sm:$0xff]   ;;  %v688_v19 = vld [vmem:[#allocation6 + $0x38] sm:$0xff]   ;;  %vm231_vm8 = vsmask.f32 256  ;;  %s207_s8 = scalar_lea.vmem [#allocation8], %s587_s18 }
  0x5c   : > { %v242_v7 = vor.u32 %v240_v4, %v239_v6  ;;  %v251_v10 = vor.u32 %v250_v8, %v237_v3  ;;  %v689_v20 = vld [vmem:[#allocation6 + $0x40] sm:$0xff]   ;;  %v690_v22 = vld [vmem:[#allocation6 + $0x48] sm:$0xff]   ;;  %v691_v23 = vld [vmem:[#allocation6 + $0x50] sm:$0xff]   ;;  %vm245_vm10 = vsmask.f32 7938  ;;  %s449_s9 = sshll.u32 %s207_s8, 4  ;;  %s1049_s9 = int_to_ptr.vmem [resolvable:$true] %s449_s9 }
  0x5d   : > { %369 = vmatpush1.bf16.msra.mxu0 %v682_v5  ;;  %v692_v24 = vld [vmem:[#allocation6 + $0x58] sm:$0xff]   ;;  %vm232_vm9 = vmand %vm230_vm7, %vm231_vm8  ;;  %s611_s4 = sshll.u32 %s906_s16, 8  ;;  %s431_s27 = scalar_lea.sflag [#allocation5], %s1030_s6 }
  0x5e   : > { %370 = vmatprep.subr.bf16.mxu0 %v859_v0  ;;  %v256_v13 = vsel %vm254_vm2, %v251_v10, %v255_v12  ;;  %vm246_vm11 = vmand %vm244_vm1, %vm245_vm10  ;;  %s1054_s11 = scalar_lea.hbm %s1132_s2, %s611_s4  ;;  %s751_s28 = scalar_lea.vmem %s1049_s9, 256 }
  0x5f   : > { %257 = vst [vmem:[#allocation2 + $0x8] sm:$0xff] %v256_v13  ;;  %p752_p4 = scmp.ne.s32.totalorder %s1049_s9, %s751_s28  ;;  %s861_s23 = smov [#allocation8]  }
  0x60   : > { %s755_s29 = sshll.u32 %s861_s23, 4  ;;  %s756_s29 = int_to_ptr.vmem [resolvable:$false] %s755_s29 }
  0x61   : > { %371 = vmatpush1.bf16.msra.mxu0 %v683_v9  ;;  %p753_p6 = pnand %p752_p4, %p979_p12  ;;  %s757_s30 = scalar_lea.vmem %s756_s29, 512 }
  0x62   : > { %372 = vmatprep.subr.bf16.mxu0 %v859_v0  ;;  %p758_p10 = scmp.lt.s32.totalorder %s1049_s9, %s756_s29  ;;  %p759_p13 = scmp.lt.s32.totalorder %s757_s30, %s751_s28 }
  0x63   : > { %p754_p8 = pneg %p753_p6 }
  0x64   : > { %p760_p3 = por %p759_p13, %p758_p10 }
  0x65   : > { %373 = vmatpush1.bf16.msra.mxu0 %v684_v11 }
  0x66   : > { %374 = vmatprep.subr.bf16.mxu0 %v859_v0  ;;  %v261_v16 = vld [vmem:[#allocation2 + $0x8] sm:$0x80]  ;;  %p761_p7 = pnand %p760_p3, %p754_p8 }
  0x67   : > { %v262_v18 = vsel %vm260_vm5, 0, %v261_v16 }
  0x68   : > { %263 = vst [vmem:[#allocation2 + $0x8] sm:$0x80] %v262_v18 }
  0x69   : > { %375 = vmatpush1.bf16.msra.mxu0 %v685_v14 }
  0x6a   : > { %376 = vmatprep.subr.bf16.mxu0 %v859_v0 }
  0x6d   : > { %377 = vmatpush1.bf16.msra.mxu0 %v686_v15 }
  0x6e   : > { %378 = vmatprep.subr.bf16.mxu0 %v859_v0 }
  0x6f   : > { %v265_v21 = vld [vmem:[#allocation2 + $0x8] sm:$0xff] }
  0x70   : > { %602 = vmatprep.mubr.msk.bf16.mxu0 %vm244_vm1, %v265_v21 }
  0x71   : > { %379 = vmatpush1.bf16.msra.mxu0 %v687_v17 }
  0x72   : > { %380 = vmatprep.subr.bf16.mxu0 %v859_v0 }
  0x75   : > { %381 = vmatpush1.bf16.msra.mxu0 %v688_v19 }
  0x76   : > { %382 = vmatprep.subr.bf16.mxu0 %v859_v0 }
  0x79   : > { %383 = vmatpush1.bf16.msra.mxu0 %v689_v20 }
  0x7a   : > { %384 = vmatprep.subr.bf16.mxu0 %v859_v0 }
  0x7d   : > { %385 = vmatpush1.bf16.msra.mxu0 %v690_v22 }
  0x7e   : > { %386 = vmatprep.subr.bf16.mxu0 %v859_v0 }
  0x81   : > { %387 = vmatpush1.bf16.msra.mxu0 %v691_v23 }
  0x82   : > { %388 = vmatprep.subr.bf16.mxu0 %v859_v0 }
  0x85   : > { %389 = vmatpush1.bf16.msra.mxu0 %v692_v24 }
  0xca   : > { %v226_v25 = vpop.permute.xlu0 %225 }
  0xcb   : > { %229 = vst.msk [vmem:[#allocation2] sm:$0xff] %vm228_vm6, %v226_v25 }
  0xd2   : > { %v233_v26 = vld [vmem:[#allocation2] sm:$0x1] }
  0xd3   : > { %v234_v27 = vsel %vm232_vm9, 0, %v233_v26 }
  0xd4   : > { %235 = vst [vmem:[#allocation2] sm:$0x1] %v234_v27 }
  0xdb   : > { %v247_v28 = vld [vmem:[#allocation2] sm:$0xff] }
  0xdc   : > { %v248_v29 = vsel %vm246_vm11, %v242_v7, %v247_v28 }
  0xdd   : > { %249 = vst [vmem:[#allocation2] sm:$0xff] %v248_v29  ;;  %399 = vmatmul.mubr.bf16.vlgmr.msra.gmra.mrb[0].mxu0 %v248_v29 }
 0x1b0   : > { %v400_v30 = vpop.f32.mrb[0].mxu0 }
 0x1b1   : > { %407 = vst [vmem:[%s207_s8] sm:$0xff] %v400_v30  ;;  %v402_v31 = vpop.f32.mrb[1].mxu0  ;;  %v416_v33 = vmul.f32 %v400_v30, %v400_v30 }
 0x1b2   : > { %v403_v32 = vpop.f32.mrb[2].mxu0 }
 0x1b3   : > { %408 = vst [vmem:[%s207_s8 + $0x8] sm:$0xff] %v403_v32  ;;  %v409_v34 = vadd.f32 %v403_v32, %v400_v30  ;;  %v417_v35 = vmul.f32 %v403_v32, %v403_v32  ;;  %v405_v36 = vpop.f32.mrb[3].mxu0 }
 0x1b4   : > { %764 = shalt.err (!%p761_p7)
}
 0x1b5   : > { %s765_s22 = scalar_lea.hbm %s1054_s11, 256  ;;  %s769_s20 = scalar_lea.hbm %s1132_s2, 512 }
 0x1b6   : > { %p766_p9 = scmp.ne.s32.totalorder %s1054_s11, %s765_s22  ;;  %p770_p5 = scmp.lt.u32.totalorder %s1054_s11, %s1132_s2 }
 0x1b7   : > { %p771_p11 = scmp.lt.u32.totalorder %s769_s20, %s765_s22  ;;  %p773_p4 = scmp.lt.u32.totalorder %s765_s22, %s1054_s11 }
 0x1b8   : > { %p767_p1 = pnand %p766_p9, %p979_p12 }
 0x1b9   : > { %p772_p2 = por %p771_p11, %p770_p5 }
 0x1ba   : > { %p768_p0 = pneg %p767_p1 }
 0x1bb   : > { %p774_p6 = por %p773_p4, %p772_p2 }
 0x1bd   : > { %p775_p8 = pnand %p774_p6, %p768_p0 }
 0x1bf   : > { %778 = shalt.err (!%p775_p8)
}
 0x1c0   : > { %s862_s4 = smov 128   ;;  %s863_s25 = smov 8   ;;  %v410_v37 = vrot.slane %v409_v34, 4  ;;  %v418_v38 = vadd.f32 %v417_v35, %v416_v33  ;;  %vm425_vm12 = vcmask 1040384   ;;  %vm427_vm13 = vcmask 1041408  }
 0x1c1   : > { %618 = dma.vmem_to_hbm [thread:$0]  (%p979_p12), %s1049_s9, 256, %s1054_s11, %s431_s27, %s862_s4, %s862_s4, %s863_s25  }
 0x1c2   : > { %v411_v39 = vadd.f32 %v410_v37, %v409_v34  ;;  %v419_v40 = vrot.slane %v418_v38, 4  ;;  %s607_s5 = sshll.u32 %s906_s16, 7  ;;  %s214_s28 = scalar_lea.vmem [#allocation9], %s585_s7 }
 0x1c3   : > { %s465_s23 = sshll.u32 %s214_s28, 4  ;;  %s1086_s27 = scalar_lea.hbm %s1133_s3, %s607_s5  ;;  %s1088_s23 = int_to_ptr.vmem [resolvable:$true] %s465_s23 }
 0x1c4   : > { %v412_v41 = vrot.slane %v411_v39, 2  ;;  %v420_v42 = vadd.f32 %v419_v40, %v418_v38  ;;  %s436_s16 = scalar_lea.sflag [#allocation10], %s1030_s6  ;;  %s779_s29 = scalar_lea.vmem %s1088_s23, 128 }
 0x1c5   : > { %p780_p10 = scmp.ne.s32.totalorder %s1088_s23, %s779_s29  ;;  %s864_s7 = smov [#allocation9]  }
 0x1c6   : > { %v413_v43 = vadd.f32 %v412_v41, %v411_v39  ;;  %v421_v44 = vrot.slane %v420_v42, 2  ;;  %s783_s30 = sshll.u32 %s864_s7, 4  ;;  %s784_s30 = int_to_ptr.vmem [resolvable:$false] %s783_s30 }
 0x1c7   : > { %p781_p13 = pnand %p780_p10, %p979_p12  ;;  %s785_s22 = scalar_lea.vmem %s784_s30, 256 }
 0x1c8   : > { %v414_v45 = vrot.slane %v413_v43, 1  ;;  %v422_v46 = vadd.f32 %v421_v44, %v420_v42  ;;  %p786_p7 = scmp.lt.s32.totalorder %s1088_s23, %s784_s30  ;;  %p787_p9 = scmp.lt.s32.totalorder %s785_s22, %s779_s29 }
 0x1c9   : > { %p782_p3 = pneg %p781_p13 }
 0x1ca   : > { %v423_v47 = vrot.slane %v422_v46, 1  ;;  %v415_v48 = vadd.f32 %v414_v45, %v413_v43  ;;  %p788_p1 = por %p787_p9, %p786_p7 }
 0x1cc   : > { %v424_v49 = vadd.f32 %v423_v47, %v422_v46  ;;  %p789_p0 = pnand %p788_p1, %p782_p3 }
 0x1ce   : > { %v426_v50 = vsel %vm425_vm12, %v415_v48, %v424_v49 }
 0x1cf   : > { %v428_v51 = vsel %vm427_vm13, %v426_v50, 0.0 }
 0x1d0   : > { %429 = vst [vmem:[%s214_s28] sm:$0xff] %v428_v51 }
 0x1d1   : > { %792 = shalt.err (!%p789_p0)
}
 0x1d2   : > { %s793_s6 = scalar_lea.hbm %s1086_s27, 128  ;;  %s797_s20 = scalar_lea.hbm %s1133_s3, 256 }
 0x1d3   : > { %p794_p5 = scmp.ne.s32.totalorder %s1086_s27, %s793_s6  ;;  %p798_p4 = scmp.lt.u32.totalorder %s1086_s27, %s1133_s3 }
 0x1d4   : > { %p799_p6 = scmp.lt.u32.totalorder %s797_s20, %s793_s6  ;;  %p801_p10 = scmp.lt.u32.totalorder %s793_s6, %s1086_s27 }
 0x1d5   : > { %p795_p11 = pnand %p794_p5, %p979_p12 }
 0x1d6   : > { %p800_p8 = por %p799_p6, %p798_p4 }
 0x1d7   : > { %p796_p2 = pneg %p795_p11 }
 0x1d8   : > { %p802_p13 = por %p801_p10, %p800_p8 }
 0x1da   : > { %p803_p3 = pnand %p802_p13, %p796_p2 }
 0x1dc   : > { %806 = shalt.err (!%p803_p3)
}
 0x1dd   : > { %619 = dma.vmem_to_hbm [thread:$0]  (%p979_p12), %s1088_s23, 128, %s1086_s27, %s436_s16  }
 0x1de PF: > { %s477_s4 = sand.u32 1, %s841_s12   ;;  %p1148_p7 = scmp.ne.s32.totalorder %s1138_s19, 0 }
 0x1df   : > { %p1149_p9 = scmp.ge.s32.totalorder %s853_s15, 2  ;;  %s478_s25 = scalar_lea.sflag [#allocation5], %s477_s4 }
 0x1e1   : > { %p631_p1 = pnand %p1149_p9, %p1148_p7 }
 0x1e3   : > { %832 = dma.done.wait (!%p631_p1), %s478_s25, 256  }
 0x1e4   : > { %834 = vsyncadd (!%p631_p1), %s478_s25, 4294967040  ;;  %s487_s5 = scalar_lea.sflag [#allocation10], %s477_s4 }
 0x1e5   : > { %836 = dma.done.wait (!%p631_p1), %s487_s5, 128  }
 0x1e6   : > { %838 = vsyncadd (!%p631_p1), %s487_s5, 4294967168  ;;  %p21_p12 = scmp.ge.s32.totalorder %s941_s24, 4   ;;  %s1150_s12 = smov %s845_s13 }
 0x1e7   : > { %s1151_s13 = smov %s849_s14  ;;  %s1152_s14 = smov %s975_s17 }
 0x1e8   : > { %s1153_s15 = smov %s941_s24  ;;  %23 = sbr.rel (!%p21_p12) target bundleno = 8 (0x8), region = 94 }
 0x1ef   :  { %492 = vsyncpa [#allocation4], 1 }
 0x1f0   :  { %494 = vsyncpa [#allocation4 + $0x1], 1 }
 0x1f1   :  { %495 = vsyncpa [#allocation7], 1 }
 0x1f2   :  { %496 = vsyncpa [#allocation5], 1 }
 0x1f3   :  { %498 = vsyncpa [#allocation5 + $0x1], 1 }
 0x1f4   :  { %499 = vsyncpa [#allocation10], 1 }
 0x1f5   :  { %501 = vsyncpa [#allocation10 + $0x1], 1 }

</bundles_post_ra>
